<compile_context>
chip_gen: v7x
topology: tpu7x:2x2x1
jax: 0.10.0
libtpu: 0.0.40
codegen_flags: <defaults>
</compile_context>

<pallas_src>
import functools

import jax
import jax.numpy as jnp
from jax.experimental import pallas as pl
from jax.experimental.pallas import tpu as pltpu


def _round_up(x, m):
    return ((x + m - 1) // m) * m


def _cdiv(a, b):
    return -(-a // b)


@functools.lru_cache(maxsize=1)
def _num_tensorcores():
    """Best-effort TensorCore count (v7x: 2 per chip). Defaults to 1."""
    try:
        info = pltpu.get_tpu_info()
    except Exception:
        return 1
    for attr in ("num_cores", "core_count", "num_tensorcores", "tensorcore_count"):
        v = getattr(info, attr, None)
        if isinstance(v, int) and v > 0:
            return v
    return 1


def _choose_batch_tiling(n):
    """16-aligned (bf16 sublane packing) batch tile, capped at 256 rows.

    Single grid step for small batches on single-TC chips (the grid is a
    serial loop there); >=2 steps only when the chip actually has 2 TCs.
    """
    min_steps = 2 if (_num_tensorcores() >= 2 and n >= 32) else 1
    steps = max(min_steps, _cdiv(n, 256))
    tile_b = _round_up(_cdiv(n, steps), 16)
    return tile_b, steps


def discriminator_kernel(x_ref, w1_ref, b1_ref, w2_ref, b2_ref, w3_ref, b3_ref, o_ref):
    # Three MXU matmuls (bf16 operands, f32 accumulation) + VPU bias/ReLU
    # epilogue, all operands VMEM-resident.  x is cast to bf16 in-kernel
    # (free under MXU slack) so the wrapper never materializes a padded bf16
    # activation copy in HBM.
    x = x_ref[...].astype(jnp.bfloat16)
    h1 = jnp.dot(x, w1_ref[...], preferred_element_type=jnp.float32) + b1_ref[...]
    h1 = jnp.maximum(h1, 0.0).astype(jnp.bfloat16)
    h2 = jnp.dot(h1, w2_ref[...], preferred_element_type=jnp.float32) + b2_ref[...]
    h2 = jnp.maximum(h2, 0.0).astype(jnp.bfloat16)
    o_ref[...] = jnp.dot(h2, w3_ref[...], preferred_element_type=jnp.float32) + b3_ref[...]


def prepare_params(params):
    """Pad + cast weights/biases ONCE; cache the result across forward calls.

    Weights are stored pre-transposed [fan_in, fan_out].  Hidden / output
    feature dims are zero-padded to multiples of 128 lanes; zero rows/cols +
    zero bias entries keep padded lanes exactly 0 through ReLU, so the math
    is unchanged.  The input feature dim stays unpadded (the kernel block
    covers it fully).  Accepts PyTorch-style 1-D biases or (1, f) biases.
    """
    c_in, hidden = params["w1"].shape
    c_out = params["w3"].shape[1]
    h_p = _round_up(hidden, 128)
    co_p = _round_up(c_out, 128)

    def pad_w(w, rows, cols):
        w = jnp.asarray(w, jnp.bfloat16)
        return jnp.pad(w, ((0, rows - w.shape[0]), (0, cols - w.shape[1])))

    def pad_b(b, cols):
        b = jnp.asarray(b, jnp.float32).reshape(1, -1)
        return jnp.pad(b, ((0, 0), (0, cols - b.shape[1])))

    padded = {
        "w1": pad_w(params["w1"], c_in, h_p),
        "b1": pad_b(params["b1"], h_p),
        "w2": pad_w(params["w2"], h_p, h_p),
        "b2": pad_b(params["b2"], h_p),
        "w3": pad_w(params["w3"], h_p, co_p),
        "b3": pad_b(params["b3"], co_p),
    }
    return padded, c_out


@functools.partial(jax.jit, static_argnames=("c_out", "single_buffer_weights"))
def _forward(x, pp, *, c_out, single_buffer_weights):
    n, c_in = x.shape
    h_p = pp["w1"].shape[1]
    co_p = pp["w3"].shape[1]

    tile_b, steps = _choose_batch_tiling(n)
    n_p = tile_b * steps
    xp = x if n_p == n else jnp.pad(x, ((0, n_p - n), (0, 0)))

    # Grid-invariant weights/biases (constant index_map): single-buffer them
    # so VMEM isn't doubled for zero pipelining benefit.
    w_mode = pl.Buffered(1) if single_buffer_weights else None

    def const_spec(shape):
        if w_mode is None:
            return pl.BlockSpec(shape, lambda i: (0, 0))
        return pl.BlockSpec(shape, lambda i: (0, 0), pipeline_mode=w_mode)

    in_specs = [
        pl.BlockSpec((tile_b, c_in), lambda i: (i, 0)),   # x tile (f32, unpadded lanes)
        const_spec((c_in, h_p)),                          # w1 (resident)
        const_spec((1, h_p)),                             # b1
        const_spec((h_p, h_p)),                           # w2 (resident)
        const_spec((1, h_p)),                             # b2
        const_spec((h_p, co_p)),                          # w3 (resident)
        const_spec((1, co_p)),                            # b3
    ]
    out_spec = pl.BlockSpec((tile_b, co_p), lambda i: (i, 0))

    # Explicit scoped-VMEM budget: double-buffered x/out tiles + resident
    # weights/biases + f32 intermediates, with ~30% headroom.
    wbuf = 1 if single_buffer_weights else 2
    w_bytes = (c_in * h_p + h_p * h_p + h_p * co_p) * 2
    b_bytes = (2 * h_p + co_p) * 4
    need = (2 * tile_b * c_in * 4            # x tiles (f32, double-buffered)
            + 2 * tile_b * co_p * 4          # out tiles (f32, double-buffered)
            + wbuf * (w_bytes + b_bytes)     # resident weights / biases
            + 2 * tile_b * h_p * 4)          # h1/h2 f32 intermediates / spill room
    vmem_limit = int(min(max(need * 1.3, 16 * 2**20), 48 * 2**20))

    flops = 2 * n_p * (c_in * h_p + h_p * h_p + h_p * co_p)
    bytes_accessed = n_p * c_in * 4 + w_bytes + b_bytes + n_p * co_p * 4

    out_padded = pl.pallas_call(
        discriminator_kernel,
        out_shape=jax.ShapeDtypeStruct((n_p, co_p), jnp.float32),
        grid_spec=pltpu.PrefetchScalarGridSpec(
            num_scalar_prefetch=0,
            grid=(steps,),
            in_specs=in_specs,
            out_specs=out_spec,
        ),
        compiler_params=pltpu.CompilerParams(
            # NOTE: on v7x, verify in the trace that the batch axis really
            # shards across both TensorCores; if not, switch this axis to
            # pltpu.CORE_PARALLEL.
            dimension_semantics=("parallel",),
            vmem_limit_bytes=vmem_limit,
        ),
        cost_estimate=pl.CostEstimate(
            flops=flops, transcendentals=0, bytes_accessed=bytes_accessed),
    )(xp, pp["w1"], pp["b1"], pp["w2"], pp["b2"], pp["w3"], pp["b3"])

    # Slice off batch/lane padding (fuses under jit).
    return out_padded[:n, :c_out]


def discriminator_forward(x, padded_params, c_out):
    """x: [N, C_in] f32.  `padded_params` comes from prepare_params (cache it!)."""
    try:
        return _forward(x, padded_params, c_out=c_out, single_buffer_weights=True)
    except Exception:
        # Fallback if this jax build rejects pipeline_mode=pl.Buffered(1).
        return _forward(x, padded_params, c_out=c_out, single_buffer_weights=False)


def init_params(key, in_channels, hidden_channels, out_channels):
    """Deterministic synthetic init mimicking nn.Linear (uniform +/- 1/sqrt(fan_in)).

    Weights are stored pre-transposed [fan_in, fan_out]; biases are 1-D
    (PyTorch-style)."""
    ks = jax.random.split(key, 6)

    def lin(kw, kb, fan_in, fan_out):
        bound = 1.0 / jnp.sqrt(jnp.float32(fan_in))
        w = jax.random.uniform(kw, (fan_in, fan_out), jnp.float32, -bound, bound)
        b = jax.random.uniform(kb, (fan_out,), jnp.float32, -bound, bound)
        return w, b

    w1, b1 = lin(ks[0], ks[1], in_channels, hidden_channels)
    w2, b2 = lin(ks[2], ks[3], hidden_channels, hidden_channels)
    w3, b3 = lin(ks[4], ks[5], hidden_channels, out_channels)
    return {"w1": w1, "b1": b1, "w2": w2, "b2": b2, "w3": w3, "b3": b3}


def reference_forward_f32(x, p):
    h1 = jnp.maximum(x @ p["w1"] + p["b1"], 0.0)
    h2 = jnp.maximum(h1 @ p["w2"] + p["b2"], 0.0)
    return h2 @ p["w3"] + p["b3"]


def reference_forward_bf16(x, p):
    """Mirrors the kernel's bf16-operand / f32-accumulate numerics."""
    bf16, f32 = jnp.bfloat16, jnp.float32
    h1 = jnp.dot(x.astype(bf16), p["w1"].astype(bf16), preferred_element_type=f32) + p["b1"]
    h1 = jnp.maximum(h1, 0.0).astype(bf16)
    h2 = jnp.dot(h1, p["w2"].astype(bf16), preferred_element_type=f32) + p["b2"]
    h2 = jnp.maximum(h2, 0.0).astype(bf16)
    return jnp.dot(h2, p["w3"].astype(bf16), preferred_element_type=f32) + p["b3"]


if __name__ == "__main__":
    key = jax.random.PRNGKey(0)
    k_x, k_p = jax.random.split(key)

    # Small shapes consistent with Discriminator(in_channels, hidden, out):
    # the PyTorch module consumes a dense 2-D matrix [N, C_in].
    # TODO(synk): the original script loads x from weight.csv via pandas;
    # replaced with deterministic random input of the same kind of shape.
    batch, in_channels, hidden_channels, out_channels = 64, 32, 64, 16
    x = jax.random.normal(k_x, (batch, in_channels), jnp.float32)
    params = init_params(k_p, in_channels, hidden_channels, out_channels)

    # Pad/cast the weights ONCE; reuse the padded copies across forward calls.
    padded_params, c_out = prepare_params(params)

    out = jax.block_until_ready(discriminator_forward(x, padded_params, c_out))
    assert out.shape == (batch, out_channels)
    assert out.dtype == jnp.float32

    ref_bf16 = reference_forward_bf16(x, params)   # same precision as kernel
    ref_f32 = reference_forward_f32(x, params)     # full-precision sanity check
    assert jnp.allclose(out, ref_bf16, atol=1e-2, rtol=1e-2), "mismatch vs bf16 reference"
    assert jnp.allclose(out, ref_f32, atol=6e-2, rtol=6e-2), "mismatch vs f32 reference"

    print("KERNEL_OK")
</pallas_src>

<mosaic_0001>
module attributes {stable_mosaic.version = 11 : i64} {
  func.func @discriminator_kernel(%arg0: i32, %arg1: memref<64x32xf32, #tpu.memory_space<vmem>>, %arg2: memref<32x128xbf16, #tpu.memory_space<vmem>>, %arg3: memref<1x128xf32, #tpu.memory_space<vmem>>, %arg4: memref<128x128xbf16, #tpu.memory_space<vmem>>, %arg5: memref<1x128xf32, #tpu.memory_space<vmem>>, %arg6: memref<128x128xbf16, #tpu.memory_space<vmem>>, %arg7: memref<1x128xf32, #tpu.memory_space<vmem>>, %arg8: memref<64x128xf32, #tpu.memory_space<vmem>>) attributes {dimension_semantics = [#tpu.dimension_semantics<parallel>], iteration_bounds = array<i64: 1>, scalar_prefetch = 0 : i64, scratch_operands = 0 : i64, tpu.core_type = #tpu.core_type<tc>, window_params = [{transform_indices = @transform_0, window_bounds = array<i64: 64, 32>}, {pipeline_mode = #tpu.pipeline_mode<synchronous>, transform_indices = @transform_1, window_bounds = array<i64: 32, 128>}, {pipeline_mode = #tpu.pipeline_mode<synchronous>, transform_indices = @transform_2, window_bounds = array<i64: 1, 128>}, {pipeline_mode = #tpu.pipeline_mode<synchronous>, transform_indices = @transform_3, window_bounds = array<i64: 128, 128>}, {pipeline_mode = #tpu.pipeline_mode<synchronous>, transform_indices = @transform_4, window_bounds = array<i64: 1, 128>}, {pipeline_mode = #tpu.pipeline_mode<synchronous>, transform_indices = @transform_5, window_bounds = array<i64: 128, 128>}, {pipeline_mode = #tpu.pipeline_mode<synchronous>, transform_indices = @transform_6, window_bounds = array<i64: 1, 128>}, {transform_indices = @transform_7, window_bounds = array<i64: 64, 128>}]} {
    %c0 = arith.constant 0 : index
    %c0_0 = arith.constant 0 : index
    %0 = vector.load %arg1[%c0, %c0_0] : memref<64x32xf32, #tpu.memory_space<vmem>>, vector<64x32xf32>
    %1 = arith.truncf %0 : vector<64x32xf32> to vector<64x32xbf16>
    %c0_1 = arith.constant 0 : index
    %c0_2 = arith.constant 0 : index
    %2 = vector.load %arg2[%c0_1, %c0_2] : memref<32x128xbf16, #tpu.memory_space<vmem>>, vector<32x128xbf16>
    %cst = arith.constant dense<0.000000e+00> : vector<64x128xf32>
    %3 = tpu.matmul %1, %2, %cst {dimension_numbers = #tpu.dot_dimension_numbers<[1], [0], [0], [1], [0, 0, 1, 1], [], []>} : vector<64x32xbf16>, vector<32x128xbf16>, vector<64x128xf32> -> vector<64x128xf32>
    %c0_3 = arith.constant 0 : index
    %c0_4 = arith.constant 0 : index
    %4 = vector.load %arg3[%c0_3, %c0_4] : memref<1x128xf32, #tpu.memory_space<vmem>>, vector<1x128xf32>
    %5 = vector.broadcast %4 : vector<1x128xf32> to vector<64x128xf32>
    %6 = arith.addf %3, %5 : vector<64x128xf32>
    %cst_5 = arith.constant 0.000000e+00 : f32
    %7 = vector.broadcast %cst_5 : f32 to vector<64x128xf32>
    %8 = arith.maximumf %6, %7 : vector<64x128xf32>
    %9 = arith.truncf %8 : vector<64x128xf32> to vector<64x128xbf16>
    %c0_6 = arith.constant 0 : index
    %c0_7 = arith.constant 0 : index
    %10 = vector.load %arg4[%c0_6, %c0_7] : memref<128x128xbf16, #tpu.memory_space<vmem>>, vector<128x128xbf16>
    %cst_8 = arith.constant dense<0.000000e+00> : vector<64x128xf32>
    %11 = tpu.matmul %9, %10, %cst_8 {dimension_numbers = #tpu.dot_dimension_numbers<[1], [0], [0], [1], [0, 0, 1, 1], [], []>} : vector<64x128xbf16>, vector<128x128xbf16>, vector<64x128xf32> -> vector<64x128xf32>
    %c0_9 = arith.constant 0 : index
    %c0_10 = arith.constant 0 : index
    %12 = vector.load %arg5[%c0_9, %c0_10] : memref<1x128xf32, #tpu.memory_space<vmem>>, vector<1x128xf32>
    %13 = vector.broadcast %12 : vector<1x128xf32> to vector<64x128xf32>
    %14 = arith.addf %11, %13 : vector<64x128xf32>
    %cst_11 = arith.constant 0.000000e+00 : f32
    %15 = vector.broadcast %cst_11 : f32 to vector<64x128xf32>
    %16 = arith.maximumf %14, %15 : vector<64x128xf32>
    %17 = arith.truncf %16 : vector<64x128xf32> to vector<64x128xbf16>
    %c0_12 = arith.constant 0 : index
    %c0_13 = arith.constant 0 : index
    %18 = vector.load %arg6[%c0_12, %c0_13] : memref<128x128xbf16, #tpu.memory_space<vmem>>, vector<128x128xbf16>
    %cst_14 = arith.constant dense<0.000000e+00> : vector<64x128xf32>
    %19 = tpu.matmul %17, %18, %cst_14 {dimension_numbers = #tpu.dot_dimension_numbers<[1], [0], [0], [1], [0, 0, 1, 1], [], []>} : vector<64x128xbf16>, vector<128x128xbf16>, vector<64x128xf32> -> vector<64x128xf32>
    %c0_15 = arith.constant 0 : index
    %c0_16 = arith.constant 0 : index
    %20 = vector.load %arg7[%c0_15, %c0_16] : memref<1x128xf32, #tpu.memory_space<vmem>>, vector<1x128xf32>
    %21 = vector.broadcast %20 : vector<1x128xf32> to vector<64x128xf32>
    %22 = arith.addf %19, %21 : vector<64x128xf32>
    %c0_17 = arith.constant 0 : index
    %c0_18 = arith.constant 0 : index
    %23 = vector.load %arg8[%c0_17, %c0_18] : memref<64x128xf32, #tpu.memory_space<vmem>>, vector<64x128xf32>
    tpu.vector_store %arg8[%c0_17, %c0_18], %22 {strides = array<i32>} : memref<64x128xf32, #tpu.memory_space<vmem>>, vector<64x128xf32>,
    return
  }
  func.func @transform_0(%arg0: i32) -> (i32, i32) {
    %c0_i32 = arith.constant 0 : i32
    %c0_i32_0 = arith.constant 0 : i32
    return %arg0, %c0_i32 : i32, i32
  }
  func.func @transform_1(%arg0: i32) -> (i32, i32) {
    %c0_i32 = arith.constant 0 : i32
    %c0_i32_0 = arith.constant 0 : i32
    %c0_i32_1 = arith.constant 0 : i32
    return %c0_i32, %c0_i32_0 : i32, i32
  }
  func.func @transform_2(%arg0: i32) -> (i32, i32) {
    %c0_i32 = arith.constant 0 : i32
    %c0_i32_0 = arith.constant 0 : i32
    %c0_i32_1 = arith.constant 0 : i32
    return %c0_i32, %c0_i32_0 : i32, i32
  }
  func.func @transform_3(%arg0: i32) -> (i32, i32) {
    %c0_i32 = arith.constant 0 : i32
    %c0_i32_0 = arith.constant 0 : i32
    %c0_i32_1 = arith.constant 0 : i32
    return %c0_i32, %c0_i32_0 : i32, i32
  }
  func.func @transform_4(%arg0: i32) -> (i32, i32) {
    %c0_i32 = arith.constant 0 : i32
    %c0_i32_0 = arith.constant 0 : i32
    %c0_i32_1 = arith.constant 0 : i32
    return %c0_i32, %c0_i32_0 : i32, i32
  }
  func.func @transform_5(%arg0: i32) -> (i32, i32) {
    %c0_i32 = arith.constant 0 : i32
    %c0_i32_0 = arith.constant 0 : i32
    %c0_i32_1 = arith.constant 0 : i32
    return %c0_i32, %c0_i32_0 : i32, i32
  }
  func.func @transform_6(%arg0: i32) -> (i32, i32) {
    %c0_i32 = arith.constant 0 : i32
    %c0_i32_0 = arith.constant 0 : i32
    %c0_i32_1 = arith.constant 0 : i32
    return %c0_i32, %c0_i32_0 : i32, i32
  }
  func.func @transform_7(%arg0: i32) -> (i32, i32) {
    %c0_i32 = arith.constant 0 : i32
    %c0_i32_0 = arith.constant 0 : i32
    return %arg0, %c0_i32 : i32, i32
  }
}

module attributes {stable_mosaic.version = 11 : i64} {
  func.func @discriminator_kernel(%arg0: i32, %arg1: memref<64x32xf32, #tpu.memory_space<vmem>>, %arg2: memref<32x128xbf16, #tpu.memory_space<vmem>>, %arg3: memref<1x128xf32, #tpu.memory_space<vmem>>, %arg4: memref<128x128xbf16, #tpu.memory_space<vmem>>, %arg5: memref<1x128xf32, #tpu.memory_space<vmem>>, %arg6: memref<128x128xbf16, #tpu.memory_space<vmem>>, %arg7: memref<1x128xf32, #tpu.memory_space<vmem>>, %arg8: memref<64x128xf32, #tpu.memory_space<vmem>>) attributes {dimension_semantics = [#tpu.dimension_semantics<parallel>], iteration_bounds = array<i64: 1>, scalar_prefetch = 0 : i64, scratch_operands = 0 : i64, tpu.core_type = #tpu.core_type<tc>, window_params = [{transform_indices = @transform_0, window_bounds = array<i64: 64, 32>}, {pipeline_mode = #tpu.pipeline_mode<synchronous>, transform_indices = @transform_1, window_bounds = array<i64: 32, 128>}, {pipeline_mode = #tpu.pipeline_mode<synchronous>, transform_indices = @transform_2, window_bounds = array<i64: 1, 128>}, {pipeline_mode = #tpu.pipeline_mode<synchronous>, transform_indices = @transform_3, window_bounds = array<i64: 128, 128>}, {pipeline_mode = #tpu.pipeline_mode<synchronous>, transform_indices = @transform_4, window_bounds = array<i64: 1, 128>}, {pipeline_mode = #tpu.pipeline_mode<synchronous>, transform_indices = @transform_5, window_bounds = array<i64: 128, 128>}, {pipeline_mode = #tpu.pipeline_mode<synchronous>, transform_indices = @transform_6, window_bounds = array<i64: 1, 128>}, {transform_indices = @transform_7, window_bounds = array<i64: 64, 128>}]} {
    %c0 = arith.constant 0 : index
    %c0_0 = arith.constant 0 : index
    %0 = vector.load %arg1[%c0, %c0_0] : memref<64x32xf32, #tpu.memory_space<vmem>>, vector<64x32xf32>
    %1 = arith.truncf %0 : vector<64x32xf32> to vector<64x32xbf16>
    %c0_1 = arith.constant 0 : index
    %c0_2 = arith.constant 0 : index
    %2 = vector.load %arg2[%c0_1, %c0_2] : memref<32x128xbf16, #tpu.memory_space<vmem>>, vector<32x128xbf16>
    %cst = arith.constant dense<0.000000e+00> : vector<64x128xf32>
    %3 = tpu.matmul %1, %2, %cst {dimension_numbers = #tpu.dot_dimension_numbers<[1], [0], [0], [1], [0, 0, 1, 1], [], []>} : vector<64x32xbf16>, vector<32x128xbf16>, vector<64x128xf32> -> vector<64x128xf32>
    %c0_3 = arith.constant 0 : index
    %c0_4 = arith.constant 0 : index
    %4 = vector.load %arg3[%c0_3, %c0_4] : memref<1x128xf32, #tpu.memory_space<vmem>>, vector<1x128xf32>
    %5 = vector.broadcast %4 : vector<1x128xf32> to vector<64x128xf32>
    %6 = arith.addf %3, %5 : vector<64x128xf32>
    %cst_5 = arith.constant 0.000000e+00 : f32
    %7 = vector.broadcast %cst_5 : f32 to vector<64x128xf32>
    %8 = arith.maximumf %6, %7 : vector<64x128xf32>
    %9 = arith.truncf %8 : vector<64x128xf32> to vector<64x128xbf16>
    %c0_6 = arith.constant 0 : index
    %c0_7 = arith.constant 0 : index
    %10 = vector.load %arg4[%c0_6, %c0_7] : memref<128x128xbf16, #tpu.memory_space<vmem>>, vector<128x128xbf16>
    %cst_8 = arith.constant dense<0.000000e+00> : vector<64x128xf32>
    %11 = tpu.matmul %9, %10, %cst_8 {dimension_numbers = #tpu.dot_dimension_numbers<[1], [0], [0], [1], [0, 0, 1, 1], [], []>} : vector<64x128xbf16>, vector<128x128xbf16>, vector<64x128xf32> -> vector<64x128xf32>
    %c0_9 = arith.constant 0 : index
    %c0_10 = arith.constant 0 : index
    %12 = vector.load %arg5[%c0_9, %c0_10] : memref<1x128xf32, #tpu.memory_space<vmem>>, vector<1x128xf32>
    %13 = vector.broadcast %12 : vector<1x128xf32> to vector<64x128xf32>
    %14 = arith.addf %11, %13 : vector<64x128xf32>
    %cst_11 = arith.constant 0.000000e+00 : f32
    %15 = vector.broadcast %cst_11 : f32 to vector<64x128xf32>
    %16 = arith.maximumf %14, %15 : vector<64x128xf32>
    %17 = arith.truncf %16 : vector<64x128xf32> to vector<64x128xbf16>
    %c0_12 = arith.constant 0 : index
    %c0_13 = arith.constant 0 : index
    %18 = vector.load %arg6[%c0_12, %c0_13] : memref<128x128xbf16, #tpu.memory_space<vmem>>, vector<128x128xbf16>
    %cst_14 = arith.constant dense<0.000000e+00> : vector<64x128xf32>
    %19 = tpu.matmul %17, %18, %cst_14 {dimension_numbers = #tpu.dot_dimension_numbers<[1], [0], [0], [1], [0, 0, 1, 1], [], []>} : vector<64x128xbf16>, vector<128x128xbf16>, vector<64x128xf32> -> vector<64x128xf32>
    %c0_15 = arith.constant 0 : index
    %c0_16 = arith.constant 0 : index
    %20 = vector.load %arg7[%c0_15, %c0_16] : memref<1x128xf32, #tpu.memory_space<vmem>>, vector<1x128xf32>
    %21 = vector.broadcast %20 : vector<1x128xf32> to vector<64x128xf32>
    %22 = arith.addf %19, %21 : vector<64x128xf32>
    %c0_17 = arith.constant 0 : index
    %c0_18 = arith.constant 0 : index
    %23 = vector.load %arg8[%c0_17, %c0_18] : memref<64x128xf32, #tpu.memory_space<vmem>>, vector<64x128xf32>
    tpu.vector_store %arg8[%c0_17, %c0_18], %22 {strides = array<i32>} : memref<64x128xf32, #tpu.memory_space<vmem>>, vector<64x128xf32>,
    return
  }
  func.func @transform_0(%arg0: i32) -> (i32, i32) {
    %c0_i32 = arith.constant 0 : i32
    %c0_i32_0 = arith.constant 0 : i32
    return %arg0, %c0_i32 : i32, i32
  }
  func.func @transform_1(%arg0: i32) -> (i32, i32) {
    %c0_i32 = arith.constant 0 : i32
    %c0_i32_0 = arith.constant 0 : i32
    %c0_i32_1 = arith.constant 0 : i32
    return %c0_i32, %c0_i32_0 : i32, i32
  }
  func.func @transform_2(%arg0: i32) -> (i32, i32) {
    %c0_i32 = arith.constant 0 : i32
    %c0_i32_0 = arith.constant 0 : i32
    %c0_i32_1 = arith.constant 0 : i32
    return %c0_i32, %c0_i32_0 : i32, i32
  }
  func.func @transform_3(%arg0: i32) -> (i32, i32) {
    %c0_i32 = arith.constant 0 : i32
    %c0_i32_0 = arith.constant 0 : i32
    %c0_i32_1 = arith.constant 0 : i32
    return %c0_i32, %c0_i32_0 : i32, i32
  }
  func.func @transform_4(%arg0: i32) -> (i32, i32) {
    %c0_i32 = arith.constant 0 : i32
    %c0_i32_0 = arith.constant 0 : i32
    %c0_i32_1 = arith.constant 0 : i32
    return %c0_i32, %c0_i32_0 : i32, i32
  }
  func.func @transform_5(%arg0: i32) -> (i32, i32) {
    %c0_i32 = arith.constant 0 : i32
    %c0_i32_0 = arith.constant 0 : i32
    %c0_i32_1 = arith.constant 0 : i32
    return %c0_i32, %c0_i32_0 : i32, i32
  }
  func.func @transform_6(%arg0: i32) -> (i32, i32) {
    %c0_i32 = arith.constant 0 : i32
    %c0_i32_0 = arith.constant 0 : i32
    %c0_i32_1 = arith.constant 0 : i32
    return %c0_i32, %c0_i32_0 : i32, i32
  }
  func.func @transform_7(%arg0: i32) -> (i32, i32) {
    %c0_i32 = arith.constant 0 : i32
    %c0_i32_0 = arith.constant 0 : i32
    return %arg0, %c0_i32 : i32, i32
  }
}

</mosaic_0001>

<bundles_post_ra>
// kernel: _forward.1
= control target key start
LH: loop header
LB: loop body
LE: loop exit
PB: predicated region body
PF: predicated region fallthrough
CT: control target
= control target key end

     0   :  { %12 = vsyncpa [#allocation3], 0  ;;  %s623_s24 = smov [#allocation2]   ;;  %s769_s0 = inlined_call_operand.vmem [shape: f32[64,32], index: 0, kind: input, shape index: {}]   ;;  %s770_s1 = inlined_call_operand.vmem [shape: bf16[32,128], index: 1, kind: input, shape index: {}]   ;;  %s771_s2 = inlined_call_operand.vmem [shape: f32[1,128], index: 2, kind: input, shape index: {}]   ;;  %s772_s3 = inlined_call_operand.vmem [shape: bf16[128,128], index: 3, kind: input, shape index: {}]   ;;  %s773_s4 = inlined_call_operand.vmem [shape: f32[1,128], index: 4, kind: input, shape index: {}]   ;;  %s774_s5 = inlined_call_operand.hbm [shape: bf16[128,128], index: 5, kind: input, shape index: {}]   ;;  %s775_s6 = inlined_call_operand.vmem [shape: f32[1,128], index: 6, kind: input, shape index: {}]   ;;  %s776_s7 = inlined_call_operand.vmem [shape: f32[64,128], index: 7, kind: output, shape index: {}]  }
   0x1   :  { %s28_s25 = sshll.u32 %s623_s24, 4  ;;  %s599_s28 = scalar_lea.hbm %s774_s5, 1024  ;;  %s29_s25 = int_to_ptr.vmem [resolvable:$true] %s28_s25 }
   0x2   :  { %p600_p0 = scmp.ne.s32.totalorder %s774_s5, %s599_s28  ;;  %p603_p1 = scmp.lt.u32.totalorder %s599_s28, %s774_s5 }
   0x4   :  { %p605_p2 = pnand %p603_p1, %p600_p0 }
   0x6   :  { %608 = shalt.err (!%p605_p2)
}
   0x7   :  { %s609_s10 = scalar_lea.vmem %s29_s25, 1024  ;;  %p614_p4 = scmp.lt.s32.totalorder %s29_s25, %s29_s25 }
   0x8   :  { %p610_p3 = scmp.ne.s32.totalorder %s29_s25, %s609_s10  ;;  %p615_p5 = scmp.lt.s32.totalorder %s609_s10, %s609_s10 }
   0xa   :  { %p616_p6 = por %p615_p5, %p614_p4 }
   0xc   :  { %p617_p7 = pnand %p616_p6, %p610_p3 }
   0xe   :  { %620 = shalt.err (!%p617_p7)
}
   0xf   :  { %s624_s11 = smov 64   ;;  %s625_s12 = smov 4  }
  0x10   :  { %34 = dma.hbm_to_vmem [thread:$0]  %s774_s5, 1024, %s29_s25, [#allocation3], %s624_s11, %s624_s11, %s625_s12  }
  0x11   :  { %621 = dma.done.wait [#allocation3], 1024  }
  0x12   :  { %622 = vsyncadd [#allocation3], 4294966272  ;;  %v581_v0 = vld [vmem:[%s770_s1] sm:$0xff]   ;;  %v582_v1 = vld [vmem:[%s770_s1 + $0x8] sm:$0xff]   ;;  %vm76_vm0 = vcmask 261120  }
  0x13   :  { %518 = vmatprep.subr.bf16.mxu0 %v581_v0  ;;  %v41_v2 = vld [vmem:[%s769_s0] sm:$0xff]  ;;  %v42_v3 = vld [vmem:[%s769_s0 + $0x8] sm:$0xff]  ;;  %v43_v5 = vld [vmem:[%s769_s0 + $0x10] sm:$0xff] }
  0x14   :  { %519 = vmatpush3.bf16.msra.mxu0 %v581_v0  ;;  %v49_v4 = vpack.c.bf16 %v42_v3, %v41_v2  ;;  %v44_v6 = vld [vmem:[%s769_s0 + $0x18] sm:$0xff]  ;;  %v45_v7 = vld [vmem:[%s769_s0 + $0x20] sm:$0xff]  ;;  %v46_v8 = vld [vmem:[%s769_s0 + $0x28] sm:$0xff] }
  0x15   :  { %520 = vmatprep.subr.bf16.mxu0 %v582_v1  ;;  %v583_v9 = vld [vmem:[%s772_s3] sm:$0xff]   ;;  %v50_v10 = vpack.c.bf16 %v44_v6, %v43_v5  ;;  %v584_v11 = vld [vmem:[%s772_s3 + $0x8] sm:$0xff]   ;;  %v51_v12 = vpack.c.bf16 %v46_v8, %v45_v7  ;;  %v47_v13 = vld [vmem:[%s769_s0 + $0x30] sm:$0xff] }
  0x16   :  { %522 = vmatprep.mubr.msk.bf16.mxu0 %vm76_vm0, %v49_v4  ;;  %530 = vmatprep.subr.bf16.mxu1 %v583_v9  ;;  %v585_v14 = vld [vmem:[%s772_s3 + $0x10] sm:$0xff]   ;;  %v48_v15 = vld [vmem:[%s769_s0 + $0x38] sm:$0xff]  ;;  %v587_v18 = vld [vmem:[%s772_s3 + $0x20] sm:$0xff]  }
  0x17   :  { %531 = vmatpush3.bf16.msra.mxu1 %v583_v9  ;;  %v586_v16 = vld [vmem:[%s772_s3 + $0x18] sm:$0xff]   ;;  %v52_v17 = vpack.c.bf16 %v48_v15, %v47_v13  ;;  %v588_v19 = vld [vmem:[%s772_s3 + $0x28] sm:$0xff]   ;;  %v589_v20 = vld [vmem:[%s772_s3 + $0x30] sm:$0xff]  }
  0x18   :  { %521 = vmatpush3.bf16.msra.mxu0 %v582_v1  ;;  %532 = vmatprep.subr.bf16.mxu1 %v584_v11  ;;  %v590_v21 = vld [vmem:[%s772_s3 + $0x38] sm:$0xff]   ;;  %v591_v22 = vld [vmem:[#allocation2] sm:$0xff]   ;;  %v592_v23 = vld [vmem:[#allocation2 + $0x8] sm:$0xff]  }
  0x19   :  { %554 = vmatprep.subr.bf16.mxu0 %v591_v22  ;;  %v593_v24 = vld [vmem:[#allocation2 + $0x10] sm:$0xff]   ;;  %v594_v25 = vld [vmem:[#allocation2 + $0x18] sm:$0xff]   ;;  %v595_v26 = vld [vmem:[#allocation2 + $0x20] sm:$0xff]  }
  0x1a   :  { %v596_v27 = vld [vmem:[#allocation2 + $0x28] sm:$0xff]   ;;  %v463_v28 = vld [vmem:[%s771_s2] ss:$0 sm:$0xff]  ;;  %v597_v57 = vld [vmem:[#allocation2 + $0x30] sm:$0xff]  }
  0x1b   :  { %523 = vmatmul.mubr.msk.bf16.vlgmr.msra.gmra.mrb[0].mxu0 %vm76_vm0, %v50_v10  ;;  %533 = vmatpush3.bf16.msra.mxu1 %v584_v11  ;;  %v598_v58 = vld [vmem:[#allocation2 + $0x38] sm:$0xff]   ;;  %v470_v59 = vld [vmem:[%s773_s4] ss:$0 sm:$0xff] }
  0x1c   :  { %526 = vmatprep.mubr.msk.bf16.mxu0 %vm76_vm0, %v51_v12  ;;  %534 = vmatprep.subr.bf16.mxu1 %v585_v14 }
  0x1d   :  { %555 = vmatpush3.bf16.msra.mxu0 %v591_v22 }
  0x1e   :  { %556 = vmatprep.subr.bf16.mxu0 %v592_v23 }
  0x1f   :  { %535 = vmatpush3.bf16.msra.mxu1 %v585_v14 }
  0x20   :  { %536 = vmatprep.subr.bf16.mxu1 %v586_v16 }
  0x21   :  { %557 = vmatpush3.bf16.msra.mxu0 %v592_v23 }
  0x22   :  { %558 = vmatprep.subr.bf16.mxu0 %v593_v24 }
  0x23   :  { %527 = vmatmul.mubr.msk.bf16.gmra.mrb[4].mxu0 %vm76_vm0, %v52_v17  ;;  %537 = vmatpush3.bf16.msra.mxu1 %v586_v16 }
  0x24   :  { %538 = vmatprep.subr.bf16.mxu1 %v587_v18 }
  0x25   :  { %559 = vmatpush3.bf16.msra.mxu0 %v593_v24  ;;  %v479_v24 = vld [vmem:[%s775_s6] ss:$0 sm:$0xff] }
  0x26   :  { %560 = vmatprep.subr.bf16.mxu0 %v594_v25 }
  0x27   :  { %539 = vmatpush3.bf16.msra.mxu1 %v587_v18 }
  0x28   :  { %540 = vmatprep.subr.bf16.mxu1 %v588_v19 }
  0x29   :  { %561 = vmatpush3.bf16.msra.mxu0 %v594_v25 }
  0x2a   :  { %562 = vmatprep.subr.bf16.mxu0 %v595_v26 }
  0x2b   :  { %541 = vmatpush3.bf16.msra.mxu1 %v588_v19 }
  0x2c   :  { %542 = vmatprep.subr.bf16.mxu1 %v589_v20 }
  0x2d   :  { %563 = vmatpush3.bf16.msra.mxu0 %v595_v26 }
  0x2e   :  { %564 = vmatprep.subr.bf16.mxu0 %v596_v27 }
  0x2f   :  { %543 = vmatpush3.bf16.msra.mxu1 %v589_v20 }
  0x30   :  { %544 = vmatprep.subr.bf16.mxu1 %v590_v21 }
  0x31   :  { %565 = vmatpush3.bf16.msra.mxu0 %v596_v27 }
  0x32   :  { %566 = vmatprep.subr.bf16.mxu0 %v597_v57 }
  0x33   :  { %545 = vmatpush3.bf16.msra.mxu1 %v590_v21 }
  0x35   :  { %567 = vmatpush3.bf16.msra.mxu0 %v597_v57 }
  0x36   :  { %568 = vmatprep.subr.bf16.mxu0 %v598_v58 }
  0x39   :  { %569 = vmatpush3.bf16.msra.mxu0 %v598_v58 }
  0xee   :  { %v524_v29 = vpop.f32.mrb[0].mxu0 }
  0xef   :  { %v132_v30 = vadd.f32 %v524_v29, %v463_v28  ;;  %v123_v31 = vpop.f32.mrb[1].mxu0 }
  0xf0   :  { %v124_v32 = vadd.f32 %v463_v28, %v123_v31  ;;  %v525_v33 = vpop.f32.mrb[2].mxu0 }
  0xf1   :  { %v135_v34 = vadd.f32 %v525_v33, %v463_v28  ;;  %v126_v35 = vpop.f32.mrb[3].mxu0  ;;  %v156_v37 = vmax.f32 %v132_v30, 0.0 }
  0xf2   :  { %v127_v36 = vadd.f32 %v463_v28, %v126_v35  ;;  %v154_v39 = vmax.f32 %v124_v32, 0.0 }
  0xf3   :  { %v157_v38 = vmax.f32 %v135_v34, 0.0 }
  0xf4   :  { %v155_v40 = vmax.f32 %v127_v36, 0.0 }
  0xf5   :  { %v163_v41 = vpack.c.bf16 %v157_v38, %v156_v37 }
  0xf6   :  { %v528_v42 = vpop.f32.mrb[4].mxu0  ;;  %v162_v43 = vpack.c.bf16 %v155_v40, %v154_v39 }
  0xf7   :  { %v148_v44 = vadd.f32 %v528_v42, %v463_v28  ;;  %v139_v45 = vpop.f32.mrb[5].mxu0 }
  0xf8   :  { %v140_v46 = vadd.f32 %v463_v28, %v139_v45  ;;  %v529_v47 = vpop.f32.mrb[6].mxu0  ;;  %546 = vmatprep.mubr.bf16.mxu1 %v162_v43 }
  0xf9   :  { %v151_v48 = vadd.f32 %v529_v47, %v463_v28  ;;  %v142_v49 = vpop.f32.mrb[7].mxu0  ;;  %547 = vmatmul.mubr.bf16.vlgmr.msra.gmra.mrb[0].mxu1 %v163_v41  ;;  %v160_v51 = vmax.f32 %v148_v44, 0.0 }
  0xfa   :  { %v143_v50 = vadd.f32 %v463_v28, %v142_v49  ;;  %v158_v53 = vmax.f32 %v140_v46, 0.0 }
  0xfb   :  { %v161_v52 = vmax.f32 %v151_v48, 0.0 }
  0xfc   :  { %v159_v54 = vmax.f32 %v143_v50, 0.0 }
  0xfd   :  { %v165_v55 = vpack.c.bf16 %v161_v52, %v160_v51 }
  0xfe   :  { %v164_v56 = vpack.c.bf16 %v159_v54, %v158_v53 }
 0x100   :  { %550 = vmatprep.mubr.bf16.mxu1 %v164_v56 }
 0x101   :  { %551 = vmatmul.mubr.bf16.gmra.mrb[4].mxu1 %v165_v55 }
 0x1cc   :  { %v548_v60 = vpop.f32.mrb[0].mxu1 }
 0x1cd   :  { %v280_v61 = vadd.f32 %v548_v60, %v470_v59  ;;  %v271_v62 = vpop.f32.mrb[1].mxu1 }
 0x1ce   :  { %v272_v63 = vadd.f32 %v470_v59, %v271_v62  ;;  %v549_v0 = vpop.f32.mrb[2].mxu1 }
 0x1cf   :  { %v283_v1 = vadd.f32 %v549_v0, %v470_v59  ;;  %v274_v2 = vpop.f32.mrb[3].mxu1  ;;  %v304_v4 = vmax.f32 %v280_v61, 0.0 }
 0x1d0   :  { %v275_v3 = vadd.f32 %v470_v59, %v274_v2  ;;  %v302_v6 = vmax.f32 %v272_v63, 0.0 }
 0x1d1   :  { %v305_v5 = vmax.f32 %v283_v1, 0.0 }
 0x1d2   :  { %v303_v7 = vmax.f32 %v275_v3, 0.0 }
 0x1d3   :  { %v311_v8 = vpack.c.bf16 %v305_v5, %v304_v4 }
 0x1d4   :  { %v310_v9 = vpack.c.bf16 %v303_v7, %v302_v6  ;;  %v552_v10 = vpop.f32.mrb[4].mxu1 }
 0x1d5   :  { %v296_v11 = vadd.f32 %v552_v10, %v470_v59  ;;  %v287_v12 = vpop.f32.mrb[5].mxu1 }
 0x1d6   :  { %v288_v13 = vadd.f32 %v470_v59, %v287_v12  ;;  %v553_v14 = vpop.f32.mrb[6].mxu1  ;;  %570 = vmatprep.mubr.bf16.mxu0 %v310_v9 }
 0x1d7   :  { %v299_v15 = vadd.f32 %v553_v14, %v470_v59  ;;  %v290_v16 = vpop.f32.mrb[7].mxu1  ;;  %571 = vmatmul.mubr.bf16.vlgmr.msra.gmra.mrb[8].mxu0 %v311_v8  ;;  %v308_v18 = vmax.f32 %v296_v11, 0.0 }
 0x1d8   :  { %v291_v17 = vadd.f32 %v470_v59, %v290_v16  ;;  %v306_v20 = vmax.f32 %v288_v13, 0.0 }
 0x1d9   :  { %v309_v19 = vmax.f32 %v299_v15, 0.0 }
 0x1da   :  { %v307_v21 = vmax.f32 %v291_v17, 0.0 }
 0x1db   :  { %v313_v22 = vpack.c.bf16 %v309_v19, %v308_v18 }
 0x1dc   :  { %v312_v23 = vpack.c.bf16 %v307_v21, %v306_v20 }
 0x1de   :  { %574 = vmatprep.mubr.bf16.mxu0 %v312_v23 }
 0x1df   :  { %575 = vmatmul.mubr.bf16.gmra.mrb[12].mxu0 %v313_v22 }
 0x2aa   :  { %v572_v25 = vpop.f32.mrb[8].mxu0 }
 0x2ab   :  { %v428_v26 = vadd.f32 %v572_v25, %v479_v24  ;;  %v419_v27 = vpop.f32.mrb[9].mxu0 }
 0x2ac   :  { %v420_v28 = vadd.f32 %v479_v24, %v419_v27  ;;  %v573_v29 = vpop.f32.mrb[10].mxu0 }
 0x2ad   :  { %452 = vst [vmem:[%s776_s7 + $0x10] sm:$0xff] %v428_v26  ;;  %v431_v30 = vadd.f32 %v573_v29, %v479_v24  ;;  %v422_v31 = vpop.f32.mrb[11].mxu0 }
 0x2ae   :  { %450 = vst [vmem:[%s776_s7] sm:$0xff] %v420_v28  ;;  %v423_v32 = vadd.f32 %v479_v24, %v422_v31 }
 0x2af   :  { %453 = vst [vmem:[%s776_s7 + $0x18] sm:$0xff] %v431_v30 }
 0x2b0   :  { %451 = vst [vmem:[%s776_s7 + $0x8] sm:$0xff] %v423_v32 }
 0x2b2   :  { %v576_v33 = vpop.f32.mrb[12].mxu0 }
 0x2b3   :  { %v444_v34 = vadd.f32 %v576_v33, %v479_v24  ;;  %v435_v35 = vpop.f32.mrb[13].mxu0 }
 0x2b4   :  { %v436_v36 = vadd.f32 %v479_v24, %v435_v35  ;;  %v577_v37 = vpop.f32.mrb[14].mxu0 }
 0x2b5   :  { %456 = vst [vmem:[%s776_s7 + $0x30] sm:$0xff] %v444_v34  ;;  %v447_v38 = vadd.f32 %v577_v37, %v479_v24  ;;  %v438_v39 = vpop.f32.mrb[15].mxu0 }
 0x2b6   :  { %454 = vst [vmem:[%s776_s7 + $0x20] sm:$0xff] %v436_v36  ;;  %v439_v40 = vadd.f32 %v479_v24, %v438_v39 }
 0x2b7   :  { %457 = vst [vmem:[%s776_s7 + $0x38] sm:$0xff] %v447_v38 }
 0x2b8   :  { %455 = vst [vmem:[%s776_s7 + $0x28] sm:$0xff] %v439_v40 }
 0x2b9   :  { %462 = vsyncpa [#allocation3], 1 }

// kernel: _forward.1
= control target key start
LH: loop header
LB: loop body
LE: loop exit
PB: predicated region body
PF: predicated region fallthrough
CT: control target
= control target key end

     0   :  { %12 = vsyncpa [#allocation3], 0  ;;  %s623_s24 = smov [#allocation2]   ;;  %s769_s0 = inlined_call_operand.vmem [shape: f32[64,32], index: 0, kind: input, shape index: {}]   ;;  %s770_s1 = inlined_call_operand.vmem [shape: bf16[32,128], index: 1, kind: input, shape index: {}]   ;;  %s771_s2 = inlined_call_operand.vmem [shape: f32[1,128], index: 2, kind: input, shape index: {}]   ;;  %s772_s3 = inlined_call_operand.vmem [shape: bf16[128,128], index: 3, kind: input, shape index: {}]   ;;  %s773_s4 = inlined_call_operand.vmem [shape: f32[1,128], index: 4, kind: input, shape index: {}]   ;;  %s774_s5 = inlined_call_operand.hbm [shape: bf16[128,128], index: 5, kind: input, shape index: {}]   ;;  %s775_s6 = inlined_call_operand.vmem [shape: f32[1,128], index: 6, kind: input, shape index: {}]   ;;  %s776_s7 = inlined_call_operand.vmem [shape: f32[64,128], index: 7, kind: output, shape index: {}]  }
   0x1   :  { %s28_s25 = sshll.u32 %s623_s24, 4  ;;  %s599_s28 = scalar_lea.hbm %s774_s5, 1024  ;;  %s29_s25 = int_to_ptr.vmem [resolvable:$true] %s28_s25 }
   0x2   :  { %p600_p0 = scmp.ne.s32.totalorder %s774_s5, %s599_s28  ;;  %p603_p1 = scmp.lt.u32.totalorder %s599_s28, %s774_s5 }
   0x4   :  { %p605_p2 = pnand %p603_p1, %p600_p0 }
   0x6   :  { %608 = shalt.err (!%p605_p2)
}
   0x7   :  { %s609_s10 = scalar_lea.vmem %s29_s25, 1024  ;;  %p614_p4 = scmp.lt.s32.totalorder %s29_s25, %s29_s25 }
   0x8   :  { %p610_p3 = scmp.ne.s32.totalorder %s29_s25, %s609_s10  ;;  %p615_p5 = scmp.lt.s32.totalorder %s609_s10, %s609_s10 }
   0xa   :  { %p616_p6 = por %p615_p5, %p614_p4 }
   0xc   :  { %p617_p7 = pnand %p616_p6, %p610_p3 }
   0xe   :  { %620 = shalt.err (!%p617_p7)
}
   0xf   :  { %s624_s11 = smov 64   ;;  %s625_s12 = smov 4  }
  0x10   :  { %34 = dma.hbm_to_vmem [thread:$0]  %s774_s5, 1024, %s29_s25, [#allocation3], %s624_s11, %s624_s11, %s625_s12  }
  0x11   :  { %621 = dma.done.wait [#allocation3], 1024  }
  0x12   :  { %622 = vsyncadd [#allocation3], 4294966272  ;;  %v581_v0 = vld [vmem:[%s770_s1] sm:$0xff]   ;;  %v582_v1 = vld [vmem:[%s770_s1 + $0x8] sm:$0xff]   ;;  %vm76_vm0 = vcmask 261120  }
  0x13   :  { %518 = vmatprep.subr.bf16.mxu0 %v581_v0  ;;  %v41_v2 = vld [vmem:[%s769_s0] sm:$0xff]  ;;  %v42_v3 = vld [vmem:[%s769_s0 + $0x8] sm:$0xff]  ;;  %v43_v5 = vld [vmem:[%s769_s0 + $0x10] sm:$0xff] }
  0x14   :  { %519 = vmatpush3.bf16.msra.mxu0 %v581_v0  ;;  %v49_v4 = vpack.c.bf16 %v42_v3, %v41_v2  ;;  %v44_v6 = vld [vmem:[%s769_s0 + $0x18] sm:$0xff]  ;;  %v45_v7 = vld [vmem:[%s769_s0 + $0x20] sm:$0xff]  ;;  %v46_v8 = vld [vmem:[%s769_s0 + $0x28] sm:$0xff] }
  0x15   :  { %520 = vmatprep.subr.bf16.mxu0 %v582_v1  ;;  %v583_v9 = vld [vmem:[%s772_s3] sm:$0xff]   ;;  %v50_v10 = vpack.c.bf16 %v44_v6, %v43_v5  ;;  %v584_v11 = vld [vmem:[%s772_s3 + $0x8] sm:$0xff]   ;;  %v51_v12 = vpack.c.bf16 %v46_v8, %v45_v7  ;;  %v47_v13 = vld [vmem:[%s769_s0 + $0x30] sm:$0xff] }
  0x16   :  { %522 = vmatprep.mubr.msk.bf16.mxu0 %vm76_vm0, %v49_v4  ;;  %530 = vmatprep.subr.bf16.mxu1 %v583_v9  ;;  %v585_v14 = vld [vmem:[%s772_s3 + $0x10] sm:$0xff]   ;;  %v48_v15 = vld [vmem:[%s769_s0 + $0x38] sm:$0xff]  ;;  %v587_v18 = vld [vmem:[%s772_s3 + $0x20] sm:$0xff]  }
  0x17   :  { %531 = vmatpush3.bf16.msra.mxu1 %v583_v9  ;;  %v586_v16 = vld [vmem:[%s772_s3 + $0x18] sm:$0xff]   ;;  %v52_v17 = vpack.c.bf16 %v48_v15, %v47_v13  ;;  %v588_v19 = vld [vmem:[%s772_s3 + $0x28] sm:$0xff]   ;;  %v589_v20 = vld [vmem:[%s772_s3 + $0x30] sm:$0xff]  }
  0x18   :  { %521 = vmatpush3.bf16.msra.mxu0 %v582_v1  ;;  %532 = vmatprep.subr.bf16.mxu1 %v584_v11  ;;  %v590_v21 = vld [vmem:[%s772_s3 + $0x38] sm:$0xff]   ;;  %v591_v22 = vld [vmem:[#allocation2] sm:$0xff]   ;;  %v592_v23 = vld [vmem:[#allocation2 + $0x8] sm:$0xff]  }
  0x19   :  { %554 = vmatprep.subr.bf16.mxu0 %v591_v22  ;;  %v593_v24 = vld [vmem:[#allocation2 + $0x10] sm:$0xff]   ;;  %v594_v25 = vld [vmem:[#allocation2 + $0x18] sm:$0xff]   ;;  %v595_v26 = vld [vmem:[#allocation2 + $0x20] sm:$0xff]  }
  0x1a   :  { %v596_v27 = vld [vmem:[#allocation2 + $0x28] sm:$0xff]   ;;  %v463_v28 = vld [vmem:[%s771_s2] ss:$0 sm:$0xff]  ;;  %v597_v57 = vld [vmem:[#allocation2 + $0x30] sm:$0xff]  }
  0x1b   :  { %523 = vmatmul.mubr.msk.bf16.vlgmr.msra.gmra.mrb[0].mxu0 %vm76_vm0, %v50_v10  ;;  %533 = vmatpush3.bf16.msra.mxu1 %v584_v11  ;;  %v598_v58 = vld [vmem:[#allocation2 + $0x38] sm:$0xff]   ;;  %v470_v59 = vld [vmem:[%s773_s4] ss:$0 sm:$0xff] }
  0x1c   :  { %526 = vmatprep.mubr.msk.bf16.mxu0 %vm76_vm0, %v51_v12  ;;  %534 = vmatprep.subr.bf16.mxu1 %v585_v14 }
  0x1d   :  { %555 = vmatpush3.bf16.msra.mxu0 %v591_v22 }
  0x1e   :  { %556 = vmatprep.subr.bf16.mxu0 %v592_v23 }
  0x1f   :  { %535 = vmatpush3.bf16.msra.mxu1 %v585_v14 }
  0x20   :  { %536 = vmatprep.subr.bf16.mxu1 %v586_v16 }
  0x21   :  { %557 = vmatpush3.bf16.msra.mxu0 %v592_v23 }
  0x22   :  { %558 = vmatprep.subr.bf16.mxu0 %v593_v24 }
  0x23   :  { %527 = vmatmul.mubr.msk.bf16.gmra.mrb[4].mxu0 %vm76_vm0, %v52_v17  ;;  %537 = vmatpush3.bf16.msra.mxu1 %v586_v16 }
  0x24   :  { %538 = vmatprep.subr.bf16.mxu1 %v587_v18 }
  0x25   :  { %559 = vmatpush3.bf16.msra.mxu0 %v593_v24  ;;  %v479_v24 = vld [vmem:[%s775_s6] ss:$0 sm:$0xff] }
  0x26   :  { %560 = vmatprep.subr.bf16.mxu0 %v594_v25 }
  0x27   :  { %539 = vmatpush3.bf16.msra.mxu1 %v587_v18 }
  0x28   :  { %540 = vmatprep.subr.bf16.mxu1 %v588_v19 }
  0x29   :  { %561 = vmatpush3.bf16.msra.mxu0 %v594_v25 }
  0x2a   :  { %562 = vmatprep.subr.bf16.mxu0 %v595_v26 }
  0x2b   :  { %541 = vmatpush3.bf16.msra.mxu1 %v588_v19 }
  0x2c   :  { %542 = vmatprep.subr.bf16.mxu1 %v589_v20 }
  0x2d   :  { %563 = vmatpush3.bf16.msra.mxu0 %v595_v26 }
  0x2e   :  { %564 = vmatprep.subr.bf16.mxu0 %v596_v27 }
  0x2f   :  { %543 = vmatpush3.bf16.msra.mxu1 %v589_v20 }
  0x30   :  { %544 = vmatprep.subr.bf16.mxu1 %v590_v21 }
  0x31   :  { %565 = vmatpush3.bf16.msra.mxu0 %v596_v27 }
  0x32   :  { %566 = vmatprep.subr.bf16.mxu0 %v597_v57 }
  0x33   :  { %545 = vmatpush3.bf16.msra.mxu1 %v590_v21 }
  0x35   :  { %567 = vmatpush3.bf16.msra.mxu0 %v597_v57 }
  0x36   :  { %568 = vmatprep.subr.bf16.mxu0 %v598_v58 }
  0x39   :  { %569 = vmatpush3.bf16.msra.mxu0 %v598_v58 }
  0xee   :  { %v524_v29 = vpop.f32.mrb[0].mxu0 }
  0xef   :  { %v132_v30 = vadd.f32 %v524_v29, %v463_v28  ;;  %v123_v31 = vpop.f32.mrb[1].mxu0 }
  0xf0   :  { %v124_v32 = vadd.f32 %v463_v28, %v123_v31  ;;  %v525_v33 = vpop.f32.mrb[2].mxu0 }
  0xf1   :  { %v135_v34 = vadd.f32 %v525_v33, %v463_v28  ;;  %v126_v35 = vpop.f32.mrb[3].mxu0  ;;  %v156_v37 = vmax.f32 %v132_v30, 0.0 }
  0xf2   :  { %v127_v36 = vadd.f32 %v463_v28, %v126_v35  ;;  %v154_v39 = vmax.f32 %v124_v32, 0.0 }
  0xf3   :  { %v157_v38 = vmax.f32 %v135_v34, 0.0 }
  0xf4   :  { %v155_v40 = vmax.f32 %v127_v36, 0.0 }
  0xf5   :  { %v163_v41 = vpack.c.bf16 %v157_v38, %v156_v37 }
  0xf6   :  { %v528_v42 = vpop.f32.mrb[4].mxu0  ;;  %v162_v43 = vpack.c.bf16 %v155_v40, %v154_v39 }
  0xf7   :  { %v148_v44 = vadd.f32 %v528_v42, %v463_v28  ;;  %v139_v45 = vpop.f32.mrb[5].mxu0 }
  0xf8   :  { %v140_v46 = vadd.f32 %v463_v28, %v139_v45  ;;  %v529_v47 = vpop.f32.mrb[6].mxu0  ;;  %546 = vmatprep.mubr.bf16.mxu1 %v162_v43 }
  0xf9   :  { %v151_v48 = vadd.f32 %v529_v47, %v463_v28  ;;  %v142_v49 = vpop.f32.mrb[7].mxu0  ;;  %547 = vmatmul.mubr.bf16.vlgmr.msra.gmra.mrb[0].mxu1 %v163_v41  ;;  %v160_v51 = vmax.f32 %v148_v44, 0.0 }
  0xfa   :  { %v143_v50 = vadd.f32 %v463_v28, %v142_v49  ;;  %v158_v53 = vmax.f32 %v140_v46, 0.0 }
  0xfb   :  { %v161_v52 = vmax.f32 %v151_v48, 0.0 }
  0xfc   :  { %v159_v54 = vmax.f32 %v143_v50, 0.0 }
  0xfd   :  { %v165_v55 = vpack.c.bf16 %v161_v52, %v160_v51 }
  0xfe   :  { %v164_v56 = vpack.c.bf16 %v159_v54, %v158_v53 }
 0x100   :  { %550 = vmatprep.mubr.bf16.mxu1 %v164_v56 }
 0x101   :  { %551 = vmatmul.mubr.bf16.gmra.mrb[4].mxu1 %v165_v55 }
 0x1cc   :  { %v548_v60 = vpop.f32.mrb[0].mxu1 }
 0x1cd   :  { %v280_v61 = vadd.f32 %v548_v60, %v470_v59  ;;  %v271_v62 = vpop.f32.mrb[1].mxu1 }
 0x1ce   :  { %v272_v63 = vadd.f32 %v470_v59, %v271_v62  ;;  %v549_v0 = vpop.f32.mrb[2].mxu1 }
 0x1cf   :  { %v283_v1 = vadd.f32 %v549_v0, %v470_v59  ;;  %v274_v2 = vpop.f32.mrb[3].mxu1  ;;  %v304_v4 = vmax.f32 %v280_v61, 0.0 }
 0x1d0   :  { %v275_v3 = vadd.f32 %v470_v59, %v274_v2  ;;  %v302_v6 = vmax.f32 %v272_v63, 0.0 }
 0x1d1   :  { %v305_v5 = vmax.f32 %v283_v1, 0.0 }
 0x1d2   :  { %v303_v7 = vmax.f32 %v275_v3, 0.0 }
 0x1d3   :  { %v311_v8 = vpack.c.bf16 %v305_v5, %v304_v4 }
 0x1d4   :  { %v310_v9 = vpack.c.bf16 %v303_v7, %v302_v6  ;;  %v552_v10 = vpop.f32.mrb[4].mxu1 }
 0x1d5   :  { %v296_v11 = vadd.f32 %v552_v10, %v470_v59  ;;  %v287_v12 = vpop.f32.mrb[5].mxu1 }
 0x1d6   :  { %v288_v13 = vadd.f32 %v470_v59, %v287_v12  ;;  %v553_v14 = vpop.f32.mrb[6].mxu1  ;;  %570 = vmatprep.mubr.bf16.mxu0 %v310_v9 }
 0x1d7   :  { %v299_v15 = vadd.f32 %v553_v14, %v470_v59  ;;  %v290_v16 = vpop.f32.mrb[7].mxu1  ;;  %571 = vmatmul.mubr.bf16.vlgmr.msra.gmra.mrb[8].mxu0 %v311_v8  ;;  %v308_v18 = vmax.f32 %v296_v11, 0.0 }
 0x1d8   :  { %v291_v17 = vadd.f32 %v470_v59, %v290_v16  ;;  %v306_v20 = vmax.f32 %v288_v13, 0.0 }
 0x1d9   :  { %v309_v19 = vmax.f32 %v299_v15, 0.0 }
 0x1da   :  { %v307_v21 = vmax.f32 %v291_v17, 0.0 }
 0x1db   :  { %v313_v22 = vpack.c.bf16 %v309_v19, %v308_v18 }
 0x1dc   :  { %v312_v23 = vpack.c.bf16 %v307_v21, %v306_v20 }
 0x1de   :  { %574 = vmatprep.mubr.bf16.mxu0 %v312_v23 }
 0x1df   :  { %575 = vmatmul.mubr.bf16.gmra.mrb[12].mxu0 %v313_v22 }
 0x2aa   :  { %v572_v25 = vpop.f32.mrb[8].mxu0 }
 0x2ab   :  { %v428_v26 = vadd.f32 %v572_v25, %v479_v24  ;;  %v419_v27 = vpop.f32.mrb[9].mxu0 }
 0x2ac   :  { %v420_v28 = vadd.f32 %v479_v24, %v419_v27  ;;  %v573_v29 = vpop.f32.mrb[10].mxu0 }
 0x2ad   :  { %452 = vst [vmem:[%s776_s7 + $0x10] sm:$0xff] %v428_v26  ;;  %v431_v30 = vadd.f32 %v573_v29, %v479_v24  ;;  %v422_v31 = vpop.f32.mrb[11].mxu0 }
 0x2ae   :  { %450 = vst [vmem:[%s776_s7] sm:$0xff] %v420_v28  ;;  %v423_v32 = vadd.f32 %v479_v24, %v422_v31 }
 0x2af   :  { %453 = vst [vmem:[%s776_s7 + $0x18] sm:$0xff] %v431_v30 }
 0x2b0   :  { %451 = vst [vmem:[%s776_s7 + $0x8] sm:$0xff] %v423_v32 }
 0x2b2   :  { %v576_v33 = vpop.f32.mrb[12].mxu0 }
 0x2b3   :  { %v444_v34 = vadd.f32 %v576_v33, %v479_v24  ;;  %v435_v35 = vpop.f32.mrb[13].mxu0 }
 0x2b4   :  { %v436_v36 = vadd.f32 %v479_v24, %v435_v35  ;;  %v577_v37 = vpop.f32.mrb[14].mxu0 }
 0x2b5   :  { %456 = vst [vmem:[%s776_s7 + $0x30] sm:$0xff] %v444_v34  ;;  %v447_v38 = vadd.f32 %v577_v37, %v479_v24  ;;  %v438_v39 = vpop.f32.mrb[15].mxu0 }
 0x2b6   :  { %454 = vst [vmem:[%s776_s7 + $0x20] sm:$0xff] %v436_v36  ;;  %v439_v40 = vadd.f32 %v479_v24, %v438_v39 }
 0x2b7   :  { %457 = vst [vmem:[%s776_s7 + $0x38] sm:$0xff] %v447_v38 }
 0x2b8   :  { %455 = vst [vmem:[%s776_s7 + $0x28] sm:$0xff] %v439_v40 }
 0x2b9   :  { %462 = vsyncpa [#allocation3], 1 }

</bundles_post_ra>
